<compile_context>
chip_gen: v7x
topology: tpu7x:2x2x1
jax: 0.10.0
libtpu: 0.0.40
codegen_flags: <defaults>
</compile_context>

<pallas_src>
import jax
import jax.numpy as jnp
from jax.experimental import pallas as pl
from jax.experimental.pallas import tpu as pltpu

# ---------------- model hyper-parameters (synthetic CLIP) -------------------
VOCAB = 64
CTX_T = 8          # text context length
EMB_D = 32         # transformer width (logical)
MLP_H = 64         # MLP hidden (logical)
PROJ_E = 32        # joint embedding dim (logical)
PATCH = 8          # image patch size
IMG_HW = 16        # image height/width
IMG_C = 3
PAD = 128          # physical lane-padded width for D / H / E

CLIP_MEAN = jnp.array([0.48145466, 0.4578275, 0.40821073], jnp.float32)
CLIP_STD = jnp.array([0.26862954, 0.26130258, 0.27577711], jnp.float32)

_EPS = 1e-12


# ------------------------------ kernel --------------------------------------
def _clip_towers_kernel(
    xt_ref, pat_ref, pos_ref, pool_ref,
    tw1_ref, tb1_ref, tw2_ref, tb2_ref, tproj_ref,
    iwpe_ref, ibpe_ref, iw1_ref, ib1_ref, iw2_ref, ib2_ref, iproj_ref,
    txt_out_ref, img_out_ref):
  """Both CLIP towers, whole batch, single step.

  xt:   (B, PAD)        text embeddings at the EOT position
  pat:  (B*Np, PD)      raw image patch slab (channel fastest inside a patch)
  pos:  (B*Np, PAD)     image positional embedding, tiled over the batch
  pool: (B, B*Np)       per-image mean-pool matrix (1/Np in each segment)
  outputs: (B, PAD) lane-dense slabs (first PROJ_E columns are the result)
  """

  def quick_gelu(v):                       # CLIP's MLP activation
    return v * jax.nn.sigmoid(1.702 * v)

  # ---------------- text tower (EOT rows only) ----------------
  xt = xt_ref[...]                                                  # (B, PAD)
  ht = quick_gelu(
      jnp.dot(xt, tw1_ref[...], preferred_element_type=jnp.float32)
      + tb1_ref[...])                                               # (B, PAD)
  yt = jnp.dot(ht, tw2_ref[...], preferred_element_type=jnp.float32) \
      + tb2_ref[...] + xt                                           # residual
  ft = jnp.dot(yt, tproj_ref[...], preferred_element_type=jnp.float32)
  inv_t = jax.lax.rsqrt(jnp.sum(ft * ft, axis=-1, keepdims=True) + _EPS)
  txt_out_ref[...] = ft * inv_t

  # ---------------- image tower (all patches as one slab) ----------------
  # per-channel normalisation is already folded into iwpe / ibpe
  xi = jnp.dot(pat_ref[...], iwpe_ref[...],
               preferred_element_type=jnp.float32) \
      + ibpe_ref[...] + pos_ref[...]                                # (B*Np, PAD)
  hi = quick_gelu(
      jnp.dot(xi, iw1_ref[...], preferred_element_type=jnp.float32)
      + ib1_ref[...])
  yi = jnp.dot(hi, iw2_ref[...], preferred_element_type=jnp.float32) \
      + ib2_ref[...] + xi                                           # residual
  pooled = jnp.dot(pool_ref[...], yi,
                   preferred_element_type=jnp.float32)              # (B, PAD)
  fi = jnp.dot(pooled, iproj_ref[...], preferred_element_type=jnp.float32)
  inv_i = jax.lax.rsqrt(jnp.sum(fi * fi, axis=-1, keepdims=True) + _EPS)
  img_out_ref[...] = fi * inv_i


# ------------------------------ wrapper -------------------------------------
@jax.jit
def base_clip_loss_forward(tokens, fake_imgs, params):
  """Mirrors BaseCLIPLoss.forward: returns (text_enc, fake_imgs_enc)."""
  B, _ = tokens.shape
  _, C, Hh, Ww = fake_imgs.shape
  P = PATCH
  Np = (Hh // P) * (Ww // P)
  PD = P * P * C

  # --- text glue: embed only the EOT token (argmax token id); the synthetic
  # text tower has no cross-token mixing, so this is exact.
  eot = jnp.argmax(tokens, axis=-1)                                  # (B,)
  eot_tok = jnp.take_along_axis(tokens, eot[:, None], axis=1)[:, 0]  # (B,)
  x_eot = params["tok_emb"][eot_tok] + params["txt_pos"][eot]        # (B, PAD)

  # --- image glue: NCHW -> NHWC -> (B*Np, P*P*C) patch slab (channel fastest)
  x = jnp.transpose(fake_imgs, (0, 2, 3, 1))
  x = x.reshape(B, Hh // P, P, Ww // P, P, C)
  x = jnp.transpose(x, (0, 1, 3, 2, 4, 5))
  patches = x.reshape(B * Np, PD)

  pos = jnp.tile(params["img_pos"], (B, 1))                          # (B*Np, PAD)
  pool = jnp.repeat(jnp.eye(B, dtype=jnp.float32), Np, axis=1) / Np  # (B, B*Np)

  # Single fused pallas_call, gridless: every array is one full VMEM block
  # (everything fits in well under 1 MiB of VMEM), outputs are lane-dense
  # (B, 128) slabs written once.
  txt_pad, img_pad = pl.pallas_call(
      _clip_towers_kernel,
      out_shape=(jax.ShapeDtypeStruct((B, PAD), jnp.float32),
                 jax.ShapeDtypeStruct((B, PAD), jnp.float32)),
  )(x_eot, patches, pos, pool,
    params["txt_w1"], params["txt_b1"], params["txt_w2"], params["txt_b2"],
    params["txt_proj"],
    params["img_wpe"], params["img_bpe"],
    params["img_w1"], params["img_b1"], params["img_w2"], params["img_b2"],
    params["img_proj"])

  return txt_pad[:, :PROJ_E], img_pad[:, :PROJ_E]


# ---------------------- deterministic parameter init ------------------------
def _pad_to(a, shape):
  out = jnp.zeros(shape, a.dtype)
  return out.at[tuple(slice(0, s) for s in a.shape)].set(a)


def init_params(key):
  ks = jax.random.split(key, 12)
  PD = PATCH * PATCH * IMG_C
  Np = (IMG_HW // PATCH) ** 2

  def w(k, shape, scale):
    return jax.random.normal(k, shape, jnp.float32) * scale

  # image patch-embed with CLIP per-channel normalisation folded in:
  #   (pat - mean) * invstd @ wpe + bpe
  #     == pat @ (invstd[:, None] * wpe) + (bpe - (mean * invstd) @ wpe)
  mean_t = jnp.tile(CLIP_MEAN, PATCH * PATCH)                 # (PD,)
  invstd_t = jnp.tile(1.0 / CLIP_STD, PATCH * PATCH)          # (PD,)
  wpe = w(ks[5], (PD, EMB_D), PD ** -0.5)
  bpe = jnp.zeros((EMB_D,), jnp.float32)
  wpe_folded = invstd_t[:, None] * wpe                        # (PD, D)
  bpe_folded = bpe - (mean_t * invstd_t) @ wpe                # (D,)

  params = {
      # text tower (zero-padded to PAD lanes; padding is exactly zero so the
      # first EMB_D/MLP_H/PROJ_E columns are bit-identical to the unpadded math)
      "tok_emb": _pad_to(w(ks[0], (VOCAB, EMB_D), 0.02), (VOCAB, PAD)),
      "txt_pos": _pad_to(w(ks[1], (CTX_T, EMB_D), 0.01), (CTX_T, PAD)),
      "txt_w1": _pad_to(w(ks[2], (EMB_D, MLP_H), EMB_D ** -0.5), (PAD, PAD)),
      "txt_b1": jnp.zeros((1, PAD), jnp.float32),
      "txt_w2": _pad_to(w(ks[3], (MLP_H, EMB_D), MLP_H ** -0.5), (PAD, PAD)),
      "txt_b2": jnp.zeros((1, PAD), jnp.float32),
      "txt_proj": _pad_to(w(ks[4], (EMB_D, PROJ_E), EMB_D ** -0.5), (PAD, PAD)),
      # image tower
      "img_wpe": _pad_to(wpe_folded, (PD, PAD)),
      "img_bpe": _pad_to(bpe_folded[None, :], (1, PAD)),
      "img_pos": _pad_to(w(ks[6], (Np, EMB_D), 0.01), (Np, PAD)),
      "img_w1": _pad_to(w(ks[7], (EMB_D, MLP_H), EMB_D ** -0.5), (PAD, PAD)),
      "img_b1": jnp.zeros((1, PAD), jnp.float32),
      "img_w2": _pad_to(w(ks[8], (MLP_H, EMB_D), MLP_H ** -0.5), (PAD, PAD)),
      "img_b2": jnp.zeros((1, PAD), jnp.float32),
      "img_proj": _pad_to(w(ks[9], (EMB_D, PROJ_E), EMB_D ** -0.5), (PAD, PAD)),
  }
  return params


if __name__ == "__main__":
  key = jax.random.PRNGKey(0)
  kp, kt, ki = jax.random.split(key, 3)

  params = init_params(kp)

  B = 2
  # synthetic "tokenized descriptions": (B, CTX_T) int32 token ids
  tokens = jax.random.randint(kt, (B, CTX_T), 1, VOCAB, dtype=jnp.int32)
  # fake generator output images, PyTorch NCHW layout, values in [0, 1]
  fake_imgs = jax.random.uniform(ki, (B, IMG_C, IMG_HW, IMG_HW), jnp.float32)

  text_enc, imgs_enc = base_clip_loss_forward(tokens, fake_imgs, params)
  jax.block_until_ready((text_enc, imgs_enc))

  assert text_enc.shape == (B, PROJ_E) and imgs_enc.shape == (B, PROJ_E)
  assert bool(jnp.all(jnp.isfinite(text_enc))) and bool(
      jnp.all(jnp.isfinite(imgs_enc)))
  # outputs are L2-normalised feature rows
  assert bool(jnp.allclose(jnp.linalg.norm(text_enc, axis=-1), 1.0, atol=1e-4))
  assert bool(jnp.allclose(jnp.linalg.norm(imgs_enc, axis=-1), 1.0, atol=1e-4))
  print("KERNEL_OK")
</pallas_src>

<mosaic_0001>
module attributes {stable_mosaic.version = 11 : i64} {
  func.func @_clip_towers_kernel(%arg0: memref<2x128xf32, #tpu.memory_space<vmem>>, %arg1: memref<8x192xf32, #tpu.memory_space<vmem>>, %arg2: memref<8x128xf32, #tpu.memory_space<vmem>>, %arg3: memref<2x8xf32, #tpu.memory_space<vmem>>, %arg4: memref<128x128xf32, #tpu.memory_space<vmem>>, %arg5: memref<1x128xf32, #tpu.memory_space<vmem>>, %arg6: memref<128x128xf32, #tpu.memory_space<vmem>>, %arg7: memref<1x128xf32, #tpu.memory_space<vmem>>, %arg8: memref<128x128xf32, #tpu.memory_space<vmem>>, %arg9: memref<192x128xf32, #tpu.memory_space<vmem>>, %arg10: memref<1x128xf32, #tpu.memory_space<vmem>>, %arg11: memref<128x128xf32, #tpu.memory_space<vmem>>, %arg12: memref<1x128xf32, #tpu.memory_space<vmem>>, %arg13: memref<128x128xf32, #tpu.memory_space<vmem>>, %arg14: memref<1x128xf32, #tpu.memory_space<vmem>>, %arg15: memref<128x128xf32, #tpu.memory_space<vmem>>, %arg16: memref<2x128xf32, #tpu.memory_space<vmem>>, %arg17: memref<2x128xf32, #tpu.memory_space<vmem>>) attributes {dimension_semantics = [], scalar_prefetch = 0 : i64, scratch_operands = 0 : i64, tpu.core_type = #tpu.core_type<tc>} {
    %c0 = arith.constant 0 : index
    %c0_0 = arith.constant 0 : index
    %0 = vector.load %arg0[%c0, %c0_0] : memref<2x128xf32, #tpu.memory_space<vmem>>, vector<2x128xf32>
    %c0_1 = arith.constant 0 : index
    %c0_2 = arith.constant 0 : index
    %1 = vector.load %arg4[%c0_1, %c0_2] : memref<128x128xf32, #tpu.memory_space<vmem>>, vector<128x128xf32>
    %cst = arith.constant dense<0.000000e+00> : vector<2x128xf32>
    %2 = tpu.matmul %0, %1, %cst {dimension_numbers = #tpu.dot_dimension_numbers<[1], [0], [0], [1], [0, 0, 1, 1], [], []>} : vector<2x128xf32>, vector<128x128xf32>, vector<2x128xf32> -> vector<2x128xf32>
    %c0_3 = arith.constant 0 : index
    %c0_4 = arith.constant 0 : index
    %3 = vector.load %arg5[%c0_3, %c0_4] : memref<1x128xf32, #tpu.memory_space<vmem>>, vector<1x128xf32>
    %4 = vector.broadcast %3 : vector<1x128xf32> to vector<2x128xf32>
    %5 = arith.addf %2, %4 : vector<2x128xf32>
    %cst_5 = arith.constant 1.702000e+00 : f32
    %6 = vector.broadcast %cst_5 : f32 to vector<2x128xf32>
    %7 = arith.mulf %6, %5 : vector<2x128xf32>
    %8 = arith.negf %7 : vector<2x128xf32>
    %9 = math.exp %8 : vector<2x128xf32>
    %cst_6 = arith.constant 1.000000e+00 : f32
    %10 = vector.broadcast %cst_6 : f32 to vector<2x128xf32>
    %11 = arith.addf %10, %9 : vector<2x128xf32>
    %12 = arith.divf %10, %11 : vector<2x128xf32>
    %13 = arith.mulf %5, %12 : vector<2x128xf32>
    %c0_7 = arith.constant 0 : index
    %c0_8 = arith.constant 0 : index
    %14 = vector.load %arg6[%c0_7, %c0_8] : memref<128x128xf32, #tpu.memory_space<vmem>>, vector<128x128xf32>
    %cst_9 = arith.constant dense<0.000000e+00> : vector<2x128xf32>
    %15 = tpu.matmul %13, %14, %cst_9 {dimension_numbers = #tpu.dot_dimension_numbers<[1], [0], [0], [1], [0, 0, 1, 1], [], []>} : vector<2x128xf32>, vector<128x128xf32>, vector<2x128xf32> -> vector<2x128xf32>
    %c0_10 = arith.constant 0 : index
    %c0_11 = arith.constant 0 : index
    %16 = vector.load %arg7[%c0_10, %c0_11] : memref<1x128xf32, #tpu.memory_space<vmem>>, vector<1x128xf32>
    %17 = vector.broadcast %16 : vector<1x128xf32> to vector<2x128xf32>
    %18 = arith.addf %15, %17 : vector<2x128xf32>
    %19 = arith.addf %18, %0 : vector<2x128xf32>
    %c0_12 = arith.constant 0 : index
    %c0_13 = arith.constant 0 : index
    %20 = vector.load %arg8[%c0_12, %c0_13] : memref<128x128xf32, #tpu.memory_space<vmem>>, vector<128x128xf32>
    %cst_14 = arith.constant dense<0.000000e+00> : vector<2x128xf32>
    %21 = tpu.matmul %19, %20, %cst_14 {dimension_numbers = #tpu.dot_dimension_numbers<[1], [0], [0], [1], [0, 0, 1, 1], [], []>} : vector<2x128xf32>, vector<128x128xf32>, vector<2x128xf32> -> vector<2x128xf32>
    %22 = arith.mulf %21, %21 : vector<2x128xf32>
    %cst_15 = arith.constant dense<0.000000e+00> : vector<2xf32>
    %23 = vector.multi_reduction <add>, %22, %cst_15 [1] : vector<2x128xf32> to vector<2xf32>
    %24 = vector.shape_cast %23 : vector<2xf32> to vector<2x1xf32>
    %cst_16 = arith.constant 9.99999996E-13 : f32
    %25 = vector.broadcast %cst_16 : f32 to vector<2x1xf32>
    %26 = arith.addf %24, %25 : vector<2x1xf32>
    %27 = math.rsqrt %26 : vector<2x1xf32>
    %28 = vector.broadcast %27 : vector<2x1xf32> to vector<2x128xf32>
    %29 = arith.mulf %21, %28 : vector<2x128xf32>
    %c0_17 = arith.constant 0 : index
    %c0_18 = arith.constant 0 : index
    %30 = vector.load %arg16[%c0_17, %c0_18] : memref<2x128xf32, #tpu.memory_space<vmem>>, vector<2x128xf32>
    tpu.vector_store %arg16[%c0_17, %c0_18], %29 {strides = array<i32>} : memref<2x128xf32, #tpu.memory_space<vmem>>, vector<2x128xf32>,
    %c0_19 = arith.constant 0 : index
    %c0_20 = arith.constant 0 : index
    %31 = vector.load %arg1[%c0_19, %c0_20] : memref<8x192xf32, #tpu.memory_space<vmem>>, vector<8x192xf32>
    %c0_21 = arith.constant 0 : index
    %c0_22 = arith.constant 0 : index
    %32 = vector.load %arg9[%c0_21, %c0_22] : memref<192x128xf32, #tpu.memory_space<vmem>>, vector<192x128xf32>
    %cst_23 = arith.constant dense<0.000000e+00> : vector<8x128xf32>
    %33 = tpu.matmul %31, %32, %cst_23 {dimension_numbers = #tpu.dot_dimension_numbers<[1], [0], [0], [1], [0, 0, 1, 1], [], []>} : vector<8x192xf32>, vector<192x128xf32>, vector<8x128xf32> -> vector<8x128xf32>
    %c0_24 = arith.constant 0 : index
    %c0_25 = arith.constant 0 : index
    %34 = vector.load %arg10[%c0_24, %c0_25] : memref<1x128xf32, #tpu.memory_space<vmem>>, vector<1x128xf32>
    %35 = vector.broadcast %34 : vector<1x128xf32> to vector<8x128xf32>
    %36 = arith.addf %33, %35 : vector<8x128xf32>
    %c0_26 = arith.constant 0 : index
    %c0_27 = arith.constant 0 : index
    %37 = vector.load %arg2[%c0_26, %c0_27] : memref<8x128xf32, #tpu.memory_space<vmem>>, vector<8x128xf32>
    %38 = arith.addf %36, %37 : vector<8x128xf32>
    %c0_28 = arith.constant 0 : index
    %c0_29 = arith.constant 0 : index
    %39 = vector.load %arg11[%c0_28, %c0_29] : memref<128x128xf32, #tpu.memory_space<vmem>>, vector<128x128xf32>
    %cst_30 = arith.constant dense<0.000000e+00> : vector<8x128xf32>
    %40 = tpu.matmul %38, %39, %cst_30 {dimension_numbers = #tpu.dot_dimension_numbers<[1], [0], [0], [1], [0, 0, 1, 1], [], []>} : vector<8x128xf32>, vector<128x128xf32>, vector<8x128xf32> -> vector<8x128xf32>
    %c0_31 = arith.constant 0 : index
    %c0_32 = arith.constant 0 : index
    %41 = vector.load %arg12[%c0_31, %c0_32] : memref<1x128xf32, #tpu.memory_space<vmem>>, vector<1x128xf32>
    %42 = vector.broadcast %41 : vector<1x128xf32> to vector<8x128xf32>
    %43 = arith.addf %40, %42 : vector<8x128xf32>
    %cst_33 = arith.constant 1.702000e+00 : f32
    %44 = vector.broadcast %cst_33 : f32 to vector<8x128xf32>
    %45 = arith.mulf %44, %43 : vector<8x128xf32>
    %46 = arith.negf %45 : vector<8x128xf32>
    %47 = math.exp %46 : vector<8x128xf32>
    %cst_34 = arith.constant 1.000000e+00 : f32
    %48 = vector.broadcast %cst_34 : f32 to vector<8x128xf32>
    %49 = arith.addf %48, %47 : vector<8x128xf32>
    %50 = arith.divf %48, %49 : vector<8x128xf32>
    %51 = arith.mulf %43, %50 : vector<8x128xf32>
    %c0_35 = arith.constant 0 : index
    %c0_36 = arith.constant 0 : index
    %52 = vector.load %arg13[%c0_35, %c0_36] : memref<128x128xf32, #tpu.memory_space<vmem>>, vector<128x128xf32>
    %cst_37 = arith.constant dense<0.000000e+00> : vector<8x128xf32>
    %53 = tpu.matmul %51, %52, %cst_37 {dimension_numbers = #tpu.dot_dimension_numbers<[1], [0], [0], [1], [0, 0, 1, 1], [], []>} : vector<8x128xf32>, vector<128x128xf32>, vector<8x128xf32> -> vector<8x128xf32>
    %c0_38 = arith.constant 0 : index
    %c0_39 = arith.constant 0 : index
    %54 = vector.load %arg14[%c0_38, %c0_39] : memref<1x128xf32, #tpu.memory_space<vmem>>, vector<1x128xf32>
    %55 = vector.broadcast %54 : vector<1x128xf32> to vector<8x128xf32>
    %56 = arith.addf %53, %55 : vector<8x128xf32>
    %57 = arith.addf %56, %38 : vector<8x128xf32>
    %c0_40 = arith.constant 0 : index
    %c0_41 = arith.constant 0 : index
    %58 = vector.load %arg3[%c0_40, %c0_41] : memref<2x8xf32, #tpu.memory_space<vmem>>, vector<2x8xf32>
    %cst_42 = arith.constant dense<0.000000e+00> : vector<2x128xf32>
    %59 = tpu.matmul %58, %57, %cst_42 {dimension_numbers = #tpu.dot_dimension_numbers<[1], [0], [0], [1], [0, 0, 1, 1], [], []>} : vector<2x8xf32>, vector<8x128xf32>, vector<2x128xf32> -> vector<2x128xf32>
    %c0_43 = arith.constant 0 : index
    %c0_44 = arith.constant 0 : index
    %60 = vector.load %arg15[%c0_43, %c0_44] : memref<128x128xf32, #tpu.memory_space<vmem>>, vector<128x128xf32>
    %cst_45 = arith.constant dense<0.000000e+00> : vector<2x128xf32>
    %61 = tpu.matmul %59, %60, %cst_45 {dimension_numbers = #tpu.dot_dimension_numbers<[1], [0], [0], [1], [0, 0, 1, 1], [], []>} : vector<2x128xf32>, vector<128x128xf32>, vector<2x128xf32> -> vector<2x128xf32>
    %62 = arith.mulf %61, %61 : vector<2x128xf32>
    %cst_46 = arith.constant dense<0.000000e+00> : vector<2xf32>
    %63 = vector.multi_reduction <add>, %62, %cst_46 [1] : vector<2x128xf32> to vector<2xf32>
    %64 = vector.shape_cast %63 : vector<2xf32> to vector<2x1xf32>
    %cst_47 = arith.constant 9.99999996E-13 : f32
    %65 = vector.broadcast %cst_47 : f32 to vector<2x1xf32>
    %66 = arith.addf %64, %65 : vector<2x1xf32>
    %67 = math.rsqrt %66 : vector<2x1xf32>
    %68 = vector.broadcast %67 : vector<2x1xf32> to vector<2x128xf32>
    %69 = arith.mulf %61, %68 : vector<2x128xf32>
    %c0_48 = arith.constant 0 : index
    %c0_49 = arith.constant 0 : index
    %70 = vector.load %arg17[%c0_48, %c0_49] : memref<2x128xf32, #tpu.memory_space<vmem>>, vector<2x128xf32>
    tpu.vector_store %arg17[%c0_48, %c0_49], %69 {strides = array<i32>} : memref<2x128xf32, #tpu.memory_space<vmem>>, vector<2x128xf32>,
    return
  }
}

</mosaic_0001>

<bundles_post_ra>
// kernel: base_clip_loss_forward.1
= control target key start
LH: loop header
LB: loop body
LE: loop exit
PB: predicated region body
PF: predicated region fallthrough
CT: control target
= control target key end

     0   :  { %s2016_s0 = inlined_call_operand.vmem [shape: f32[2,128], index: 0, kind: input, shape index: {}]   ;;  %s2017_s1 = inlined_call_operand.vmem [shape: f32[8,192], index: 1, kind: input, shape index: {}]   ;;  %s2018_s2 = inlined_call_operand.vmem [shape: f32[8,128], index: 2, kind: input, shape index: {}]   ;;  %s2019_s3 = inlined_call_operand.vmem [shape: f32[2,8], index: 3, kind: input, shape index: {}]   ;;  %s2020_s4 = inlined_call_operand.vmem [shape: f32[128,128], index: 4, kind: input, shape index: {}]   ;;  %s2021_s5 = inlined_call_operand.vmem [shape: f32[1,128], index: 5, kind: input, shape index: {}]   ;;  %s2022_s6 = inlined_call_operand.vmem [shape: f32[128,128], index: 6, kind: input, shape index: {}]   ;;  %s2023_s7 = inlined_call_operand.vmem [shape: f32[1,128], index: 7, kind: input, shape index: {}]   ;;  %s2024_s8 = inlined_call_operand.vmem [shape: f32[128,128], index: 8, kind: input, shape index: {}]   ;;  %s2025_s9 = inlined_call_operand.vmem [shape: f32[192,128], index: 9, kind: input, shape index: {}]   ;;  %s2026_s10 = inlined_call_operand.vmem [shape: f32[1,128], index: 10, kind: input, shape index: {}]   ;;  %s2027_s11 = inlined_call_operand.vmem [shape: f32[128,128], index: 11, kind: input, shape index: {}]   ;;  %s2028_s12 = inlined_call_operand.vmem [shape: f32[1,128], index: 12, kind: input, shape index: {}]   ;;  %s2029_s13 = inlined_call_operand.vmem [shape: f32[128,128], index: 13, kind: input, shape index: {}]   ;;  %s2030_s14 = inlined_call_operand.vmem [shape: f32[1,128], index: 14, kind: input, shape index: {}]   ;;  %s2031_s15 = inlined_call_operand.vmem [shape: f32[128,128], index: 15, kind: input, shape index: {}]   ;;  %s2032_s16 = inlined_call_operand.hbm [shape: f32[2,128], index: 16, kind: output, shape index: {0}]   ;;  %s2033_s17 = inlined_call_operand.hbm [shape: f32[2,128], index: 17, kind: output, shape index: {1}]  }
   0x1   :  { %2035 = sst [smem:[#allocation8_spill]] %s2016_s0 }
   0x2   :  { %2036 = sst [smem:[#allocation9_spill]] %s2017_s1 }
   0x3   :  { %23 = vsyncpa [#allocation3], 0  ;;  %v58_v0 = vld [vmem:[%s2020_s4] sm:$0xff]  ;;  %v59_v1 = vld [vmem:[%s2020_s4 + $0x8] sm:$0xff]  ;;  %v1422_v3 = vmov 0.0|0.0   ;;  %vm1423_vm0 = vmmov 0  }
   0x4   :  { %v60_v2 = vld [vmem:[%s2020_s4 + $0x10] sm:$0xff]  ;;  %1177 = vmatprep.subr.bf16.mxu0 %v1422_v3  ;;  %v1178_v4 = vpack.c.bf16 %v59_v1, %v58_v0  ;;  %v61_v5 = vld [vmem:[%s2020_s4 + $0x18] sm:$0xff]  ;;  %v1424_v6 = vmov 0.0   ;;  %1201 = vmatprep.subr.bf16.mxu1 %v1422_v3  ;;  %v62_v8 = vld [vmem:[%s2020_s4 + $0x20] sm:$0xff] }
   0x5   :  { %994 = vmatprep.mubr.msk.f32.mxu0 %vm1423_vm0, %v1424_v6  ;;  %1029 = vmatprep.mubr.msk.f32.mxu1 %vm1423_vm0, %v1424_v6  ;;  %v1181_v7 = vpack.c.bf16 %v61_v5, %v60_v2  ;;  %v63_v9 = vld [vmem:[%s2020_s4 + $0x28] sm:$0xff] }
   0x6   :  { %1179 = vmatpush3.bf16.msra.mxu0 %v1178_v4 }
   0x7   :  { %1180 = vmatprep.subr.bf16.mxu0 %v1422_v3 }
   0x8   :  { %24 = vsyncpa [#allocation5], 0  ;;  %v1184_v10 = vpack.c.bf16 %v63_v9, %v62_v8  ;;  %v64_v11 = vld [vmem:[%s2020_s4 + $0x30] sm:$0xff]  ;;  %v65_v12 = vld [vmem:[%s2020_s4 + $0x38] sm:$0xff]  ;;  %s2037_s28 = sld [smem:[#allocation8_spill]]  ;;  %s2038_s19 = sld [smem:[#allocation9_spill]] }
   0x9   :  { %v1187_v13 = vpack.c.bf16 %v65_v12, %v64_v11  ;;  %v66_v14 = vld [vmem:[%s2020_s4 + $0x40] sm:$0xff]  ;;  %v67_v15 = vld [vmem:[%s2020_s4 + $0x48] sm:$0xff]  ;;  %v68_v17 = vld [vmem:[%s2020_s4 + $0x50] sm:$0xff]  ;;  %vm381_vm1 = vcmask 523264   ;;  %vm340_vm2 = vcmask 1041408   ;;  %vm653_vm3 = vcmask 64512  }
   0xa   :  { %1182 = vmatpush3.bf16.msra.mxu0 %v1181_v7  ;;  %v1190_v16 = vpack.c.bf16 %v67_v15, %v66_v14  ;;  %v69_v18 = vld [vmem:[%s2020_s4 + $0x58] sm:$0xff]  ;;  %v70_v20 = vld [vmem:[%s2020_s4 + $0x60] sm:$0xff]  ;;  %v71_v21 = vld [vmem:[%s2020_s4 + $0x68] sm:$0xff] }
   0xb   :  { %1183 = vmatprep.subr.bf16.mxu0 %v1422_v3  ;;  %v1193_v19 = vpack.c.bf16 %v69_v18, %v68_v17  ;;  %v1196_v22 = vpack.c.bf16 %v71_v21, %v70_v20  ;;  %v72_v23 = vld [vmem:[%s2020_s4 + $0x70] sm:$0xff]  ;;  %v73_v24 = vld [vmem:[%s2020_s4 + $0x78] sm:$0xff]  ;;  %v159_v27 = vld [vmem:[%s2022_s6] sm:$0xff] }
   0xc   :  { %v1199_v25 = vpack.c.bf16 %v73_v24, %v72_v23  ;;  %v160_v28 = vld [vmem:[%s2022_s6 + $0x8] sm:$0xff]  ;;  %v161_v30 = vld [vmem:[%s2022_s6 + $0x10] sm:$0xff]  ;;  %v162_v31 = vld [vmem:[%s2022_s6 + $0x18] sm:$0xff] }
   0xd   :  { %v1202_v29 = vpack.c.bf16 %v160_v28, %v159_v27  ;;  %v1205_v32 = vpack.c.bf16 %v162_v31, %v161_v30  ;;  %v163_v33 = vld [vmem:[%s2022_s6 + $0x20] sm:$0xff]  ;;  %v164_v34 = vld [vmem:[%s2022_s6 + $0x28] sm:$0xff]  ;;  %v165_v36 = vld [vmem:[%s2022_s6 + $0x30] sm:$0xff] }
   0xe   :  { %1185 = vmatpush3.bf16.msra.mxu0 %v1184_v10  ;;  %v1581_v26 = vld [vmem:[%s2037_s28] sm:$0x3]  ;;  %v1208_v35 = vpack.c.bf16 %v164_v34, %v163_v33  ;;  %v166_v37 = vld [vmem:[%s2022_s6 + $0x38] sm:$0xff]  ;;  %v168_v40 = vld [vmem:[%s2022_s6 + $0x48] sm:$0xff] }
   0xf   :  { %1186 = vmatprep.subr.bf16.mxu0 %v1422_v3  ;;  %1203 = vmatpush3.bf16.msra.mxu1 %v1202_v29  ;;  %v1211_v38 = vpack.c.bf16 %v166_v37, %v165_v36  ;;  %v167_v39 = vld [vmem:[%s2022_s6 + $0x40] sm:$0xff]  ;;  %v169_v42 = vld [vmem:[%s2022_s6 + $0x50] sm:$0xff]  ;;  %v170_v43 = vld [vmem:[%s2022_s6 + $0x58] sm:$0xff] }
  0x10   :  { %1204 = vmatprep.subr.bf16.mxu1 %v1422_v3  ;;  %v1214_v41 = vpack.c.bf16 %v168_v40, %v167_v39  ;;  %v1217_v44 = vpack.c.bf16 %v170_v43, %v169_v42  ;;  %v171_v45 = vld [vmem:[%s2022_s6 + $0x60] sm:$0xff]  ;;  %v172_v46 = vld [vmem:[%s2022_s6 + $0x68] sm:$0xff]  ;;  %v173_v48 = vld [vmem:[%s2022_s6 + $0x70] sm:$0xff] }
  0x11   :  { %v1220_v47 = vpack.c.bf16 %v172_v46, %v171_v45  ;;  %v174_v49 = vld [vmem:[%s2022_s6 + $0x78] sm:$0xff]  ;;  %v253_v51 = vld [vmem:[%s2024_s8] sm:$0xff]  ;;  %v254_v52 = vld [vmem:[%s2024_s8 + $0x8] sm:$0xff] }
  0x12   :  { %1188 = vmatpush3.bf16.msra.mxu0 %v1187_v13  ;;  %v1223_v50 = vpack.c.bf16 %v174_v49, %v173_v48  ;;  %v255_v53 = vld [vmem:[%s2024_s8 + $0x10] sm:$0xff]  ;;  %v1226_v54 = vpack.c.bf16 %v254_v52, %v253_v51  ;;  %v256_v55 = vld [vmem:[%s2024_s8 + $0x18] sm:$0xff]  ;;  %v257_v57 = vld [vmem:[%s2024_s8 + $0x20] sm:$0xff] }
  0x13   :  { %1189 = vmatprep.subr.bf16.mxu0 %v1422_v3  ;;  %1206 = vmatpush3.bf16.msra.mxu1 %v1205_v32  ;;  %v1229_v56 = vpack.c.bf16 %v256_v55, %v255_v53  ;;  %v258_v58 = vld [vmem:[%s2024_s8 + $0x28] sm:$0xff]  ;;  %v259_v60 = vld [vmem:[%s2024_s8 + $0x30] sm:$0xff]  ;;  %v260_v61 = vld [vmem:[%s2024_s8 + $0x38] sm:$0xff] }
  0x14   :  { %1207 = vmatprep.subr.bf16.mxu1 %v1422_v3  ;;  %v1232_v59 = vpack.c.bf16 %v258_v58, %v257_v57  ;;  %v1235_v62 = vpack.c.bf16 %v260_v61, %v259_v60  ;;  %v261_v63 = vld [vmem:[%s2024_s8 + $0x40] sm:$0xff]  ;;  %v262_v0 = vld [vmem:[%s2024_s8 + $0x48] sm:$0xff]  ;;  %v263_v2 = vld [vmem:[%s2024_s8 + $0x50] sm:$0xff] }
  0x15   :  { %v1238_v1 = vpack.c.bf16 %v262_v0, %v261_v63  ;;  %v264_v4 = vld [vmem:[%s2024_s8 + $0x58] sm:$0xff]  ;;  %v265_v7 = vld [vmem:[%s2024_s8 + $0x60] sm:$0xff]  ;;  %v266_v8 = vld [vmem:[%s2024_s8 + $0x68] sm:$0xff] }
  0x16   :  { %1191 = vmatpush3.bf16.msra.mxu0 %v1190_v16  ;;  %v1241_v5 = vpack.c.bf16 %v264_v4, %v263_v2  ;;  %v1244_v9 = vpack.c.bf16 %v266_v8, %v265_v7  ;;  %v849_v10 = vld [vmem:[%s2021_s5] ss:$0 sm:$0xff]  ;;  %v352_v23 = vld [vmem:[%s2025_s9 + $0x10] sm:$0xff]  ;;  %v353_v24 = vld [vmem:[%s2025_s9 + $0x18] sm:$0xff] }
  0x17   :  { %1192 = vmatprep.subr.bf16.mxu0 %v1422_v3  ;;  %1209 = vmatpush3.bf16.msra.mxu1 %v1208_v35  ;;  %v350_v18 = vld [vmem:[%s2025_s9] sm:$0xff]  ;;  %v1253_v27 = vpack.c.bf16 %v353_v24, %v352_v23  ;;  %v355_v29 = vld [vmem:[%s2025_s9 + $0x28] sm:$0xff]  ;;  %v356_v31 = vld [vmem:[%s2025_s9 + $0x30] sm:$0xff] }
  0x18   :  { %1210 = vmatprep.subr.bf16.mxu1 %v1422_v3  ;;  %v354_v28 = vld [vmem:[%s2025_s9 + $0x20] sm:$0xff]  ;;  %v357_v32 = vld [vmem:[%s2025_s9 + $0x38] sm:$0xff]  ;;  %v359_v35 = vld [vmem:[%s2025_s9 + $0x48] sm:$0xff] }
  0x19   :  { %v1256_v30 = vpack.c.bf16 %v355_v29, %v354_v28  ;;  %v1259_v33 = vpack.c.bf16 %v357_v32, %v356_v31  ;;  %v358_v34 = vld [vmem:[%s2025_s9 + $0x40] sm:$0xff]  ;;  %v360_v37 = vld [vmem:[%s2025_s9 + $0x50] sm:$0xff]  ;;  %v371_v53 = vld [vmem:[%s2025_s9 + $0xa8] sm:$0xff] }
  0x1a   :  { %1194 = vmatpush3.bf16.msra.mxu0 %v1193_v19  ;;  %v351_v19 = vld [vmem:[%s2025_s9 + $0x8] sm:$0xff]  ;;  %v1262_v36 = vpack.c.bf16 %v359_v35, %v358_v34  ;;  %v362_v40 = vld [vmem:[%s2025_s9 + $0x60] sm:$0xff]  ;;  %v364_v43 = vld [vmem:[%s2025_s9 + $0x70] sm:$0xff] }
  0x1b   :  { %1195 = vmatprep.subr.bf16.mxu0 %v1422_v3  ;;  %1212 = vmatpush3.bf16.msra.mxu1 %v1211_v38  ;;  %v1250_v21 = vpack.c.bf16 %v351_v19, %v350_v18  ;;  %v361_v38 = vld [vmem:[%s2025_s9 + $0x58] sm:$0xff]  ;;  %v366_v46 = vld [vmem:[%s2025_s9 + $0x80] sm:$0xff]  ;;  %v368_v49 = vld [vmem:[%s2025_s9 + $0x90] sm:$0xff] }
  0x1c   :  { %1213 = vmatprep.subr.bf16.mxu1 %v1422_v3  ;;  %v1265_v39 = vpack.c.bf16 %v361_v38, %v360_v37  ;;  %v370_v52 = vld [vmem:[%s2025_s9 + $0xa0] sm:$0xff]  ;;  %v372_v55 = vld [vmem:[%s2025_s9 + $0xb0] sm:$0xff]  ;;  %v268_v60 = vld [vmem:[%s2024_s8 + $0x78] sm:$0xff] }
  0x1d   :  { %v348_v58 = vld [vmem:[%s2038_s19] sm:$0xff]  ;;  %v458_v0 = vld [vmem:[%s2027_s11 + $0x8] sm:$0xff]  ;;  %v459_v8 = vld [vmem:[%s2027_s11 + $0x10] sm:$0xff] }
  0x1e   :  { %1197 = vmatpush3.bf16.msra.mxu0 %v1196_v22  ;;  %v457_v63 = vld [vmem:[%s2027_s11] sm:$0xff]  ;;  %v467_v19 = vld [vmem:[%s2027_s11 + $0x50] sm:$0xff]  ;;  %v470_v23 = vld [vmem:[%s2027_s11 + $0x68] sm:$0xff] }
  0x1f   :  { %1198 = vmatprep.subr.bf16.mxu0 %v1422_v3  ;;  %1215 = vmatpush3.bf16.msra.mxu1 %v1214_v41  ;;  %v363_v41 = vld [vmem:[%s2025_s9 + $0x68] sm:$0xff]  ;;  %v852_v29 = vld [vmem:[%s2026_s10] ss:$0 sm:$0xff]  ;;  %v560_v38 = vld [vmem:[%s2029_s13 + $0x10] sm:$0xff] }
  0x20   :  { %1216 = vmatprep.subr.bf16.mxu1 %v1422_v3  ;;  %v1268_v42 = vpack.c.bf16 %v363_v41, %v362_v40  ;;  %v455_v31 = vld [vmem:[%s2018_s2] sm:$0xff] }
  0x21   :  { %v558_v35 = vld [vmem:[%s2029_s13] sm:$0xff] }
  0x22   :  { %1200 = vmatpush3.bf16.msra.mxu0 %v1199_v25  ;;  %v349_v25 = vld [vmem:[%s2038_s19 + $0x8] sm:$0xff]  ;;  %v562_v41 = vld [vmem:[%s2029_s13 + $0x20] sm:$0xff] }
  0x23   :  { %1225 = vmatprep.subr.bf16.mxu0 %v1422_v3  ;;  %1218 = vmatpush3.bf16.msra.mxu1 %v1217_v44  ;;  %v365_v44 = vld [vmem:[%s2025_s9 + $0x78] sm:$0xff] }
  0x24   :  { %1219 = vmatprep.subr.bf16.mxu1 %v1422_v3  ;;  %v1271_v45 = vpack.c.bf16 %v365_v44, %v364_v43  ;;  %v564_v44 = vld [vmem:[%s2029_s13 + $0x30] sm:$0xff] }
  0x25   :  { %995 = vmatmul.mubr.f32.vlgmr.msra.gmra.mrb[0].mxu0 %v1581_v26 }
  0x26   :  { %1064 = vmatprep.mubr.msk.f32.mxu0 %vm1423_vm0, %v1424_v6  ;;  %1227 = vmatpush3.bf16.msra.mxu0 %v1226_v54  ;;  %v1280_v54 = vpack.c.bf16 %v371_v53, %v370_v52  ;;  %v570_v53 = vld [vmem:[%s2029_s13 + $0x60] sm:$0xff] }
  0x27   :  { %1221 = vmatpush3.bf16.msra.mxu1 %v1220_v47  ;;  %1228 = vmatprep.subr.bf16.mxu0 %v1422_v3  ;;  %v367_v47 = vld [vmem:[%s2025_s9 + $0x88] sm:$0xff] }
  0x28   :  { %1222 = vmatprep.subr.bf16.mxu1 %v1422_v3  ;;  %v1274_v48 = vpack.c.bf16 %v367_v47, %v366_v46  ;;  %v566_v47 = vld [vmem:[%s2029_s13 + $0x40] sm:$0xff] }
  0x2a   :  { %1230 = vmatpush3.bf16.msra.mxu0 %v1229_v56  ;;  %v373_v56 = vld [vmem:[%s2025_s9 + $0xb8] sm:$0xff] }
  0x2b   :  { %1224 = vmatpush3.bf16.msra.mxu1 %v1223_v50  ;;  %1231 = vmatprep.subr.bf16.mxu0 %v1422_v3  ;;  %v369_v50 = vld [vmem:[%s2025_s9 + $0x98] sm:$0xff]  ;;  %v1283_v57 = vpack.c.bf16 %v373_v56, %v372_v55  ;;  %v572_v56 = vld [vmem:[%s2029_s13 + $0x70] sm:$0xff] }
  0x2c   :  { %1249 = vmatprep.subr.bf16.mxu1 %v1422_v3  ;;  %v1277_v51 = vpack.c.bf16 %v369_v50, %v368_v49  ;;  %v568_v50 = vld [vmem:[%s2029_s13 + $0x50] sm:$0xff] }
  0x2e   :  { %1233 = vmatpush3.bf16.msra.mxu0 %v1232_v59  ;;  %v267_v59 = vld [vmem:[%s2024_s8 + $0x70] sm:$0xff] }
  0x2f   :  { %1234 = vmatprep.subr.bf16.mxu0 %v1422_v3  ;;  %v1247_v61 = vpack.c.bf16 %v268_v60, %v267_v59 }
  0x32   :  { %1236 = vmatpush3.bf16.msra.mxu0 %v1235_v62  ;;  %v851_v62 = vld [vmem:[%s2023_s7] ss:$0 sm:$0xff] }
  0x33   :  { %1237 = vmatprep.subr.bf16.mxu0 %v1422_v3 }
  0x36   :  { %1239 = vmatpush3.bf16.msra.mxu0 %v1238_v1 }
  0x37   :  { %1240 = vmatprep.subr.bf16.mxu0 %v1422_v3 }
  0x3a   :  { %1242 = vmatpush3.bf16.msra.mxu0 %v1241_v5  ;;  %v1286_v5 = vpack.c.bf16 %v458_v0, %v457_v63  ;;  %v854_v63 = vld [vmem:[%s2028_s12] ss:$0 sm:$0xff] }
  0x3b   :  { %1243 = vmatprep.subr.bf16.mxu0 %v1422_v3 }
  0x3e   :  { %1245 = vmatpush3.bf16.msra.mxu0 %v1244_v9  ;;  %v460_v9 = vld [vmem:[%s2027_s11 + $0x18] sm:$0xff] }
  0x3f   :  { %1246 = vmatprep.subr.bf16.mxu0 %v1422_v3 }
  0x42   :  { %1248 = vmatpush3.bf16.msra.mxu0 %v1247_v61 }
  0x43   :  { %1285 = vmatprep.subr.bf16.mxu0 %v1422_v3 }
  0xf8   :  { %v147_v11 = vpop.f32.mrb[0].mxu0 }
  0xf9   :  { %v148_v12 = vadd.f32 %v849_v10, %v147_v11  ;;  %v996_v13 = vpop.f32.mrb[1].mxu0  ;;  %v1289_v10 = vpack.c.bf16 %v460_v9, %v459_v8  ;;  %v462_v11 = vld [vmem:[%s2027_s11 + $0x28] sm:$0xff] }
  0xfa   :  { %v463_v13 = vld [vmem:[%s2027_s11 + $0x30] sm:$0xff] }
  0xfb   :  { %v850_v14 = vmul.f32 -1.702, %v148_v12 }
  0xfd   :  { %v153_v15 = vmul.f32 1.442695, %v850_v14  ;;  %v464_v14 = vld [vmem:[%s2027_s11 + $0x38] sm:$0xff] }
  0xff   :  { %1362 = vpow2.f32 %v153_v15  ;;  %v1295_v15 = vpack.c.bf16 %v464_v14, %v463_v13  ;;  %v727_v14 = vld [vmem:[%s2031_s15] sm:$0xff] }
 0x109   :  { %v1363_v16 = vpop.eup %1362 }
 0x10a   :  { %v155_v17 = vadd.f32 1.0, %v1363_v16  ;;  %v465_v16 = vld [vmem:[%s2027_s11 + $0x40] sm:$0xff] }
 0x10c   :  { %1364 = vrcp.f32 %v155_v17  ;;  %v466_v17 = vld [vmem:[%s2027_s11 + $0x48] sm:$0xff] }
 0x10d   :  { %v1298_v18 = vpack.c.bf16 %v466_v17, %v465_v16  ;;  %v729_v16 = vld [vmem:[%s2031_s15 + $0x10] sm:$0xff] }
 0x116   :  { %v1365_v20 = vpop.eup %1364 }
 0x117   :  { %v158_v22 = vmul.f32 %v1365_v20, %v148_v12  ;;  %v468_v20 = vld [vmem:[%s2027_s11 + $0x58] sm:$0xff] }
 0x119   :  { %1030 = vmatmul.mubr.f32.vlgmr.msra.gmra.mrb[0].mxu1 %v158_v22  ;;  %v469_v22 = vld [vmem:[%s2027_s11 + $0x60] sm:$0xff] }
 0x11a   :  { %1251 = vmatpush1.bf16.msra.mxu1 %v1250_v21  ;;  %853 = vmatprep.mubr.msk.f32.mxu1 %vm381_vm1, %v349_v25  ;;  %v1301_v21 = vpack.c.bf16 %v468_v20, %v467_v19  ;;  %v1304_v24 = vpack.c.bf16 %v470_v23, %v469_v22  ;;  %v471_v25 = vld [vmem:[%s2027_s11 + $0x70] sm:$0xff]  ;;  %v731_v19 = vld [vmem:[%s2031_s15 + $0x20] sm:$0xff]  ;;  %v732_v20 = vld [vmem:[%s2031_s15 + $0x28] sm:$0xff] }
 0x11b   :  { %1252 = vmatprep.subr.bf16.mxu1 %v1422_v3  ;;  %v733_v22 = vld [vmem:[%s2031_s15 + $0x30] sm:$0xff]  ;;  %v734_v23 = vld [vmem:[%s2031_s15 + $0x38] sm:$0xff] }
 0x11e   :  { %1254 = vmatpush1.bf16.msra.mxu1 %v1253_v27  ;;  %v472_v27 = vld [vmem:[%s2027_s11 + $0x78] sm:$0xff] }
 0x11f   :  { %1255 = vmatprep.subr.bf16.mxu1 %v1422_v3  ;;  %v1307_v28 = vpack.c.bf16 %v472_v27, %v471_v25  ;;  %v735_v25 = vld [vmem:[%s2031_s15 + $0x40] sm:$0xff]  ;;  %v736_v27 = vld [vmem:[%s2031_s15 + $0x48] sm:$0xff] }
 0x122   :  { %1257 = vmatpush1.bf16.msra.mxu1 %v1256_v30 }
 0x123   :  { %1258 = vmatprep.subr.bf16.mxu1 %v1422_v3 }
 0x126   :  { %1260 = vmatpush1.bf16.msra.mxu1 %v1259_v33 }
 0x127   :  { %1261 = vmatprep.subr.bf16.mxu1 %v1422_v3 }
 0x12a   :  { %1263 = vmatpush1.bf16.msra.mxu1 %v1262_v36  ;;  %v559_v36 = vld [vmem:[%s2029_s13 + $0x8] sm:$0xff] }
 0x12b   :  { %1264 = vmatprep.subr.bf16.mxu1 %v1422_v3  ;;  %v1310_v37 = vpack.c.bf16 %v559_v36, %v558_v35  ;;  %v741_v36 = vld [vmem:[%s2031_s15 + $0x70] sm:$0xff] }
 0x12e   :  { %1266 = vmatpush1.bf16.msra.mxu1 %v1265_v39  ;;  %v561_v39 = vld [vmem:[%s2029_s13 + $0x18] sm:$0xff] }
 0x12f   :  { %1267 = vmatprep.subr.bf16.mxu1 %v1422_v3  ;;  %v1313_v40 = vpack.c.bf16 %v561_v39, %v560_v38  ;;  %v856_v39 = vld [vmem:[%s2030_s14] ss:$0 sm:$0xff]  ;;  %s1425_s14 = smov [#allocation2]  }
 0x132   :  { %1269 = vmatpush1.bf16.msra.mxu1 %v1268_v42  ;;  %v563_v42 = vld [vmem:[%s2029_s13 + $0x28] sm:$0xff] }
 0x133   :  { %1270 = vmatprep.subr.bf16.mxu1 %v1422_v3  ;;  %v1316_v43 = vpack.c.bf16 %v563_v42, %v562_v41 }
 0x136   :  { %1272 = vmatpush1.bf16.msra.mxu1 %v1271_v45  ;;  %v565_v45 = vld [vmem:[%s2029_s13 + $0x38] sm:$0xff] }
 0x137   :  { %1273 = vmatprep.subr.bf16.mxu1 %v1422_v3  ;;  %v1319_v46 = vpack.c.bf16 %v565_v45, %v564_v44  ;;  %v652_v44 = vld [vmem:[%s2019_s3] sm:$0x3] }
 0x13a   :  { %1275 = vmatpush1.bf16.msra.mxu1 %v1274_v48  ;;  %v567_v48 = vld [vmem:[%s2029_s13 + $0x48] sm:$0xff] }
 0x13b   :  { %1276 = vmatprep.subr.bf16.mxu1 %v1422_v3  ;;  %v1322_v49 = vpack.c.bf16 %v567_v48, %v566_v47 }
 0x13e   :  { %1278 = vmatpush1.bf16.msra.mxu1 %v1277_v51  ;;  %v569_v51 = vld [vmem:[%s2029_s13 + $0x58] sm:$0xff] }
 0x13f   :  { %1279 = vmatprep.subr.bf16.mxu1 %v1422_v3  ;;  %v1325_v52 = vpack.c.bf16 %v569_v51, %v568_v50 }
 0x142   :  { %1281 = vmatpush1.bf16.msra.mxu1 %v1280_v54  ;;  %v571_v54 = vld [vmem:[%s2029_s13 + $0x68] sm:$0xff] }
 0x143   :  { %1282 = vmatprep.subr.bf16.mxu1 %v1422_v3  ;;  %v1328_v55 = vpack.c.bf16 %v571_v54, %v570_v53 }
 0x146   :  { %1284 = vmatpush1.bf16.msra.mxu1 %v1283_v57  ;;  %v573_v57 = vld [vmem:[%s2029_s13 + $0x78] sm:$0xff] }
 0x147   :  { %1309 = vmatprep.subr.bf16.mxu1 %v1422_v3 }
 0x149   :  { %450 = vmatmul.mubr.f32.vlgmr.msra.gmra.mrb[2].mxu1 %v348_v58  ;;  %v1331_v58 = vpack.c.bf16 %v573_v57, %v572_v56 }
 0x14a   :  { %1134 = vmatprep.mubr.msk.f32.mxu1 %vm1423_vm0, %v1424_v6  ;;  %1311 = vmatpush3.bf16.msra.mxu1 %v1310_v37  ;;  %v742_v37 = vld [vmem:[%s2031_s15 + $0x78] sm:$0xff] }
 0x14b   :  { %1312 = vmatprep.subr.bf16.mxu1 %v1422_v3  ;;  %v1355_v38 = vpack.c.bf16 %v742_v37, %v741_v36 }
 0x14e   :  { %1314 = vmatpush3.bf16.msra.mxu1 %v1313_v40 }
 0x14f   :  { %1315 = vmatprep.subr.bf16.mxu1 %v1422_v3 }
 0x152   :  { %1317 = vmatpush3.bf16.msra.mxu1 %v1316_v43 }
 0x153   :  { %1318 = vmatprep.subr.bf16.mxu1 %v1422_v3 }
 0x156   :  { %1320 = vmatpush3.bf16.msra.mxu1 %v1319_v46 }
 0x157   :  { %1321 = vmatprep.subr.bf16.mxu1 %v1422_v3 }
 0x15a   :  { %1323 = vmatpush3.bf16.msra.mxu1 %v1322_v49 }
 0x15b   :  { %1324 = vmatprep.subr.bf16.mxu1 %v1422_v3 }
 0x15e   :  { %1326 = vmatpush3.bf16.msra.mxu1 %v1325_v52 }
 0x15f   :  { %1327 = vmatprep.subr.bf16.mxu1 %v1422_v3 }
 0x162   :  { %1329 = vmatpush3.bf16.msra.mxu1 %v1328_v55 }
 0x163   :  { %1330 = vmatprep.subr.bf16.mxu1 %v1422_v3 }
 0x166   :  { %1332 = vmatpush3.bf16.msra.mxu1 %v1331_v58 }
 0x167   :  { %1137 = vmatprep.subr.mxu1 %v1424_v6 }
 0x1ec   :  { %v248_v1 = vpop.f32.mrb[0].mxu1 }
 0x1ed   :  { %v249_v2 = vadd.f32 %v851_v62, %v248_v1  ;;  %v1031_v4 = vpop.f32.mrb[1].mxu1 }
 0x1ef   :  { %v252_v7 = vadd.f32 %v249_v2, %v1581_v26  ;;  %v461_v26 = vld [vmem:[%s2027_s11 + $0x20] sm:$0xff] }
 0x1f0   :  { %v1292_v12 = vpack.c.bf16 %v462_v11, %v461_v26 }
 0x1f1   :  { %1065 = vmatmul.mubr.f32.vlgmr.msra.gmra.mrb[2].mxu0 %v252_v7 }
 0x1f2   :  { %1287 = vmatpush3.bf16.msra.mxu0 %v1286_v5  ;;  %1099 = vmatprep.mubr.msk.f32.mxu0 %vm1423_vm0, %v1424_v6 }
 0x1f3   :  { %1288 = vmatprep.subr.bf16.mxu0 %v1422_v3 }
 0x1f6   :  { %1290 = vmatpush3.bf16.msra.mxu0 %v1289_v10 }
 0x1f7   :  { %1291 = vmatprep.subr.bf16.mxu0 %v1422_v3 }
 0x1fa   :  { %1293 = vmatpush3.bf16.msra.mxu0 %v1292_v12 }
 0x1fb   :  { %1294 = vmatprep.subr.bf16.mxu0 %v1422_v3 }
 0x1fe   :  { %1296 = vmatpush3.bf16.msra.mxu0 %v1295_v15  ;;  %v728_v15 = vld [vmem:[%s2031_s15 + $0x8] sm:$0xff] }
 0x1ff   :  { %1297 = vmatprep.subr.bf16.mxu0 %v1422_v3  ;;  %v1334_v17 = vpack.c.bf16 %v728_v15, %v727_v14 }
 0x202   :  { %1299 = vmatpush3.bf16.msra.mxu0 %v1298_v18 }
 0x203   :  { %1300 = vmatprep.subr.bf16.mxu0 %v1422_v3 }
 0x206   :  { %1302 = vmatpush3.bf16.msra.mxu0 %v1301_v21  ;;  %v1340_v21 = vpack.c.bf16 %v732_v20, %v731_v19 }
 0x207   :  { %1303 = vmatprep.subr.bf16.mxu0 %v1422_v3 }
 0x20a   :  { %1305 = vmatpush3.bf16.msra.mxu0 %v1304_v24  ;;  %v1343_v24 = vpack.c.bf16 %v734_v23, %v733_v22 }
 0x20b   :  { %1306 = vmatprep.subr.bf16.mxu0 %v1422_v3 }
 0x20e   :  { %1308 = vmatpush3.bf16.msra.mxu0 %v1307_v28  ;;  %v1346_v28 = vpack.c.bf16 %v736_v27, %v735_v25 }
 0x20f   :  { %1333 = vmatprep.subr.bf16.mxu0 %v1422_v3 }
 0x21c   :  { %v451_v30 = vpop.f32.mrb[2].mxu1 }
 0x21d   :  { %v452_v32 = vadd.f32 %v852_v29, %v451_v30  ;;  %v453_v33 = vpop.f32.mrb[3].mxu1  ;;  %v737_v29 = vld [vmem:[%s2031_s15 + $0x50] sm:$0xff]  ;;  %v738_v30 = vld [vmem:[%s2031_s15 + $0x58] sm:$0xff] }
 0x21e   :  { %v740_v33 = vld [vmem:[%s2031_s15 + $0x68] sm:$0xff] }
 0x21f   :  { %v1862_v34 = vadd.f32 %v455_v31, %v452_v32  ;;  %v1349_v31 = vpack.c.bf16 %v738_v30, %v737_v29  ;;  %v739_v32 = vld [vmem:[%s2031_s15 + $0x60] sm:$0xff] }
 0x220   :  { %v1352_v35 = vpack.c.bf16 %v740_v33, %v739_v32 }
 0x221   :  { %1100 = vmatmul.mubr.f32.vlgmr.msra.gmra.mrb[4].mxu0 %v1862_v34 }
 0x222   :  { %1174 = vmatprep.mubr.msk.f32.mxu0 %vm1423_vm0, %v1424_v6  ;;  %1335 = vmatpush3.bf16.msra.mxu0 %v1334_v17 }
 0x223   :  { %1336 = vmatprep.subr.bf16.mxu0 %v1422_v3 }
 0x2c4   :  { %v335_v59 = vpop.f32.mrb[2].mxu0 }
 0x2c5   :  { %v1066_v60 = vpop.f32.mrb[3].mxu0  ;;  %v339_v61 = vmul.f32 %v335_v59, %v335_v59 }
 0x2c7   :  { %v341_v62 = vsel %vm340_vm2, %v339_v61, 0.0 }
 0x2c8   :  { %342 = vadd.xlane.f32.xlu0 %v341_v62 }
 0x2f4   :  { %v546_v0 = vpop.f32.mrb[4].mxu0 }
 0x2f5   :  { %v547_v1 = vadd.f32 %v854_v63, %v546_v0  ;;  %v1101_v2 = vpop.f32.mrb[5].mxu0 }
 0x2f7   :  { %v855_v4 = vmul.f32 -1.702, %v547_v1 }
 0x2f9   :  { %v552_v5 = vmul.f32 1.442695, %v855_v4 }
 0x2fb   :  { %1366 = vpow2.f32 %v552_v5 }
 0x305   :  { %v1367_v7 = vpop.eup %1366 }
 0x306   :  { %v554_v8 = vadd.f32 1.0, %v1367_v7 }
 0x308   :  { %1368 = vrcp.f32 %v554_v8 }
 0x312   :  { %v1369_v9 = vpop.eup %1368 }
 0x313   :  { %v557_v10 = vmul.f32 %v1369_v9, %v547_v1 }
 0x315   :  { %1135 = vmatmul.mubr.f32.vlgmr.msra.gmra.mrb[4].mxu1 %v557_v10 }
 0x316   :  { %1139 = vmatprep.mubr.msk.f32.mxu1 %vm1423_vm0, %v1424_v6  ;;  %v730_v6 = vld [vmem:[%s2031_s15 + $0x18] sm:$0xff]  ;;  %s827_s15 = sshll.u32 %s1425_s14, 4  ;;  %s828_s15 = int_to_ptr.vmem [resolvable:$true] %s827_s15 }
 0x317   :  { %v1337_v18 = vpack.c.bf16 %v730_v6, %v729_v16  ;;  %s1374_s6 = scalar_lea.vmem %s828_s15, 32  ;;  %p1379_p1 = scmp.lt.s32.totalorder %s828_s15, %s828_s15 }
 0x318   :  { %p1375_p0 = scmp.ne.s32.totalorder %s828_s15, %s1374_s6  ;;  %p1380_p2 = scmp.lt.s32.totalorder %s1374_s6, %s1374_s6 }
 0x319   :  { %1338 = vmatpush3.bf16.msra.mxu0 %v1337_v18 }
 0x31a   :  { %1339 = vmatprep.subr.bf16.mxu0 %v1422_v3  ;;  %p1381_p3 = por %p1380_p2, %p1379_p1 }
 0x31c   :  { %p1382_p4 = pnand %p1381_p3, %p1375_p0 }
 0x31d   :  { %1341 = vmatpush3.bf16.msra.mxu0 %v1340_v21 }
 0x31e   :  { %1342 = vmatprep.subr.bf16.mxu0 %v1422_v3 }
 0x321   :  { %1344 = vmatpush3.bf16.msra.mxu0 %v1343_v24 }
 0x322   :  { %1345 = vmatprep.subr.bf16.mxu0 %v1422_v3 }
 0x325   :  { %1347 = vmatpush3.bf16.msra.mxu0 %v1346_v28 }
 0x326   :  { %1348 = vmatprep.subr.bf16.mxu0 %v1422_v3 }
 0x329   :  { %1350 = vmatpush3.bf16.msra.mxu0 %v1349_v31 }
 0x32a   :  { %1351 = vmatprep.subr.bf16.mxu0 %v1422_v3 }
 0x32d   :  { %1353 = vmatpush3.bf16.msra.mxu0 %v1352_v35 }
 0x32e   :  { %1354 = vmatprep.subr.bf16.mxu0 %v1422_v3 }
 0x331   :  { %1356 = vmatpush3.bf16.msra.mxu0 %v1355_v38 }
 0x355   :  { %v343_v26 = vpop.xlane.xlu0 %342 }
 0x356   :  { %v344_v11 = vadd.f32 1e-12, %v343_v26 }
 0x358   :  { %1370 = vrsqrt.f32 %v344_v11 }
 0x362   :  { %v1371_v12 = vpop.eup %1370 }
 0x363   :  { %v346_v13 = vmul.f32 %v1371_v12, %v335_v59 }
 0x365   :  { %347 = vst [vmem:[#allocation2] sm:$0x3] %v346_v13 }
 0x3e8   :  { %v647_v40 = vpop.f32.mrb[4].mxu1 }
 0x3e9   :  { %v648_v41 = vadd.f32 %v856_v39, %v647_v40  ;;  %v1136_v42 = vpop.f32.mrb[5].mxu1 }
 0x3eb   :  { %v651_v43 = vadd.f32 %v648_v41, %v1862_v34 }
 0x3ed   :  { %1138 = vmatpush3.msra.mxu1 %v651_v43 }
 0x3ee   :  { %1140 = vmatmul.mubr.msk.f32.vlgmr.msra.gmra.mrb[6].mxu1 %vm653_vm3, %v652_v44 }
 0x4c1   :  { %v723_v45 = vpop.f32.mrb[6].mxu1 }
 0x4c2   :  { %1175 = vmatmul.mubr.f32.vlgmr.msra.gmra.mrb[6].mxu0 %v723_v45  ;;  %v1141_v3 = vpop.f32.mrb[7].mxu1 }
 0x595   :  { %v809_v46 = vpop.f32.mrb[6].mxu0 }
 0x596   :  { %v813_v47 = vmul.f32 %v809_v46, %v809_v46  ;;  %v1176_v48 = vpop.f32.mrb[7].mxu0 }
 0x598   :  { %v814_v49 = vsel %vm340_vm2, %v813_v47, 0.0 }
 0x599   :  { %815 = vadd.xlane.f32.xlu0 %v814_v49 }
 0x59a   :  { %1385 = shalt.err (!%p1382_p4)
}
 0x59b   :  { %s1386_s22 = scalar_lea.hbm %s2032_s16, 32 }
 0x59c   :  { %p1387_p5 = scmp.ne.s32.totalorder %s2032_s16, %s1386_s22  ;;  %p1390_p6 = scmp.lt.u32.totalorder %s1386_s22, %s2032_s16 }
 0x59e   :  { %p1392_p7 = pnand %p1390_p6, %p1387_p5 }
 0x5a0   :  { %1395 = shalt.err (!%p1392_p7)
}
 0x5a1   :  { %830 = dma.vmem_to_hbm [thread:$0]  %s828_s15, 32, %s2032_s16, [#allocation3]  }
 0x5a2   :  { %s1426_s10 = smov [#allocation4]  }
 0x5a3   :  { %s837_s2 = sshll.u32 %s1426_s10, 4  ;;  %s838_s2 = int_to_ptr.vmem [resolvable:$true] %s837_s2 }
 0x5a4   :  { %s1396_s9 = scalar_lea.vmem %s838_s2, 32  ;;  %p1401_p9 = scmp.lt.s32.totalorder %s838_s2, %s838_s2 }
 0x5a5   :  { %p1397_p8 = scmp.ne.s32.totalorder %s838_s2, %s1396_s9  ;;  %p1402_p10 = scmp.lt.s32.totalorder %s1396_s9, %s1396_s9 }
 0x5a7   :  { %p1403_p11 = por %p1402_p10, %p1401_p9 }
 0x5a9   :  { %p1404_p12 = pnand %p1403_p11, %p1397_p8 }
 0x626   :  { %v816_v34 = vpop.xlane.xlu0 %815 }
 0x627   :  { %v817_v50 = vadd.f32 1e-12, %v816_v34 }
 0x629   :  { %1372 = vrsqrt.f32 %v817_v50 }
 0x633   :  { %v1373_v51 = vpop.eup %1372 }
 0x634   :  { %v819_v52 = vmul.f32 %v1373_v51, %v809_v46 }
 0x636   :  { %820 = vst [vmem:[#allocation4] sm:$0x3] %v819_v52 }
 0x637   :  { %1407 = shalt.err (!%p1404_p12)
}
 0x638   :  { %s1408_s16 = scalar_lea.hbm %s2033_s17, 32 }
 0x639   :  { %p1409_p13 = scmp.ne.s32.totalorder %s2033_s17, %s1408_s16  ;;  %p1412_p0 = scmp.lt.u32.totalorder %s1408_s16, %s2033_s17 }
 0x63b   :  { %p1414_p1 = pnand %p1412_p0, %p1409_p13 }
 0x63d   :  { %1417 = shalt.err (!%p1414_p1)
}
 0x63e   :  { %840 = dma.vmem_to_hbm [thread:$0]  %s838_s2, 32, %s2033_s17, [#allocation5]  }
 0x63f   :  { %1418 = dma.done.wait [#allocation3], 32  }
 0x640   :  { %1419 = vsyncadd [#allocation3], 4294967264 }
 0x641   :  { %1420 = dma.done.wait [#allocation5], 32  }
 0x642   :  { %1421 = vsyncadd [#allocation5], 4294967264 }
 0x643   :  { %847 = vsyncpa [#allocation3], 1 }
 0x644   :  { %848 = vsyncpa [#allocation5], 1 }

</bundles_post_ra>
